<compile_context>
chip_gen: v7x
topology: tpu7x:2x2x1
jax: 0.10.0
libtpu: 0.0.40
codegen_flags: <defaults>
</compile_context>

<pallas_src>
import functools

import jax
import jax.numpy as jnp
from jax.experimental import pallas as pl
from jax.experimental.pallas import tpu as pltpu

LN_EPS = 1e-5
LANE = 128


def _round_up(x, m):
    return (x + m - 1) // m * m


def _masked_layernorm(x, gamma, beta, n_true):
    """LayerNorm over the last dim of x [B, Np], where only the first n_true
    columns are real data (padded columns are guaranteed zero).  Matches
    torch.nn.LayerNorm (biased variance, eps inside sqrt)."""
    n_pad = x.shape[-1]
    if n_pad == n_true:
        mean = jnp.sum(x, axis=-1, keepdims=True) / n_true
        d = x - mean
        var = jnp.sum(d * d, axis=-1, keepdims=True) / n_true
    else:
        col = jax.lax.broadcasted_iota(jnp.int32, x.shape, dimension=1)
        mask = (col < n_true).astype(x.dtype)
        mean = jnp.sum(x * mask, axis=-1, keepdims=True) / n_true
        d = (x - mean) * mask
        var = jnp.sum(d * d, axis=-1, keepdims=True) / n_true
    inv = jax.lax.rsqrt(var + LN_EPS)
    # Padded gamma/beta are zero -> padded output columns stay exactly zero.
    return (x - mean) * inv * gamma + beta


def dynamics_kernel(obs_ref, act_ref,
                    w1_ref, b1_ref, g1_ref, bt1_ref,
                    w2h_ref, w2a_ref, b2_ref, g2_ref, bt2_ref,
                    w3_ref, b3_ref,
                    out_ref, acc_ref,
                    *, f_true, h_true):
    k = pl.program_id(1)

    @pl.when(k == 0)
    def _():
        # Fuse the layer-1 bias into the accumulator init.
        acc_ref[...] = jnp.broadcast_to(b1_ref[...], acc_ref.shape)

    # --- trunk Linear: accumulate obs @ W1 over the repr_dim (K) grid axis ---
    acc_ref[...] += jnp.dot(obs_ref[...], w1_ref[...],
                            preferred_element_type=jnp.float32)

    # --- finalize: LN/tanh + dynamics_model, only on the last K step ---
    @pl.when(k == pl.num_programs(1) - 1)
    def _():
        h_pre = acc_ref[...]                                       # [TB, Fp] f32
        h = jnp.tanh(_masked_layernorm(h_pre, g1_ref[...], bt1_ref[...], f_true))

        # concat([h, action]) @ W2 == h @ W2h + action @ W2a
        z_pre = (jnp.dot(h.astype(jnp.bfloat16), w2h_ref[...],
                         preferred_element_type=jnp.float32)
                 + jnp.dot(act_ref[...], w2a_ref[...],
                           preferred_element_type=jnp.float32)
                 + b2_ref[...])                                    # [TB, Hp] f32

        z = _masked_layernorm(z_pre, g2_ref[...], bt2_ref[...], h_true)
        z = jnp.maximum(z, 0.0)

        out = jnp.dot(z.astype(jnp.bfloat16), w3_ref[...],
                      preferred_element_type=jnp.float32) + b3_ref[...]
        out_ref[...] = out.astype(out_ref.dtype)


def _pad2(x, rows, cols, dtype):
    out = jnp.zeros((rows, cols), dtype)
    return out.at[:x.shape[0], :x.shape[1]].set(x.astype(dtype))


def dynamics_model_forward(obs, action, params, *, tb=None, tk=None):
    (w1, b1, g1, bt1, w2, b2, g2, bt2, w3, b3) = params
    B, R = obs.shape
    A = action.shape[1]
    F = w1.shape[1]
    H = w2.shape[1]

    # Lane padding (128-wide) for feature/hidden/action dims.
    Fp = _round_up(F, LANE)
    Hp = _round_up(H, LANE)
    Ap = _round_up(A, LANE)

    # Tile sizes: batch tile (sublane-aligned) and repr_dim K-tile.  Defaults
    # keep double-buffered obs/W1 tiles around ~2 MiB bf16 -> safe on v5e/v6e
    # (128 MiB VMEM) and v7x (64 MiB physical / 32 MiB default scoped).
    TB = tb if tb is not None else min(_round_up(B, 8), 256)
    TK = tk if tk is not None else min(_round_up(R, LANE), 2048)
    Bp = _round_up(B, TB)
    Rp = _round_up(R, TK)

    bf16 = jnp.bfloat16
    f32 = jnp.float32

    # bf16 MXU operands (halves HBM traffic for the dominant obs/W1 streams).
    obs_p = _pad2(obs, Bp, Rp, bf16)
    act_p = _pad2(action, Bp, Ap, bf16)
    w1_p = _pad2(w1, Rp, Fp, bf16)
    w2h_p = _pad2(w2[:F, :], Fp, Hp, bf16)     # host-side split of concat dim
    w2a_p = _pad2(w2[F:, :], Ap, Hp, bf16)
    w3_p = _pad2(w3, Hp, Fp, bf16)

    # Small params stay f32 (LayerNorm / bias math in f32); padded cols zero.
    b1_p = _pad2(b1.reshape(1, -1), 1, Fp, f32)
    g1_p = _pad2(g1.reshape(1, -1), 1, Fp, f32)
    bt1_p = _pad2(bt1.reshape(1, -1), 1, Fp, f32)
    b2_p = _pad2(b2.reshape(1, -1), 1, Hp, f32)
    g2_p = _pad2(g2.reshape(1, -1), 1, Hp, f32)
    bt2_p = _pad2(bt2.reshape(1, -1), 1, Hp, f32)
    b3_p = _pad2(b3.reshape(1, -1), 1, Fp, f32)

    grid = (Bp // TB, Rp // TK)

    kernel = functools.partial(dynamics_kernel, f_true=F, h_true=H)

    def const_spec(r, c):
        # Grid-invariant resident block (same block every step -> no re-DMA).
        return pl.BlockSpec((r, c), lambda i, k: (0, 0))

    out_p = pl.pallas_call(
        kernel,
        out_shape=jax.ShapeDtypeStruct((Bp, Fp), f32),
        grid=grid,
        in_specs=[
            pl.BlockSpec((TB, TK), lambda i, k: (i, k)),   # obs tile
            pl.BlockSpec((TB, Ap), lambda i, k: (i, 0)),   # action tile
            pl.BlockSpec((TK, Fp), lambda i, k: (k, 0)),   # W1 K-tile
            const_spec(1, Fp), const_spec(1, Fp), const_spec(1, Fp),   # b1,g1,bt1
            const_spec(Fp, Hp), const_spec(Ap, Hp),                    # W2h, W2a
            const_spec(1, Hp), const_spec(1, Hp), const_spec(1, Hp),   # b2,g2,bt2
            const_spec(Hp, Fp), const_spec(1, Fp),                     # W3, b3
        ],
        out_specs=pl.BlockSpec((TB, Fp), lambda i, k: (i, 0)),
        scratch_shapes=[pltpu.VMEM((TB, Fp), jnp.float32)],
        compiler_params=pltpu.CompilerParams(
            dimension_semantics=("parallel", "arbitrary")),
    )(obs_p, act_p, w1_p, b1_p, g1_p, bt1_p,
      w2h_p, w2a_p, b2_p, g2_p, bt2_p, w3_p, b3_p)

    return out_p[:B, :F]


def init_params(key, repr_dim, action_dim, feature_dim, hidden_dim):
    ks = jax.random.split(key, 3)
    w1 = jax.random.normal(ks[0], (repr_dim, feature_dim), jnp.float32) * 0.1
    b1 = jnp.zeros((1, feature_dim), jnp.float32)
    g1 = jnp.ones((1, feature_dim), jnp.float32)
    bt1 = jnp.zeros((1, feature_dim), jnp.float32)

    w2 = jax.random.normal(ks[1], (feature_dim + action_dim, hidden_dim), jnp.float32) * 0.1
    b2 = jnp.zeros((1, hidden_dim), jnp.float32)
    g2 = jnp.ones((1, hidden_dim), jnp.float32)
    bt2 = jnp.zeros((1, hidden_dim), jnp.float32)

    w3 = jax.random.normal(ks[2], (hidden_dim, feature_dim), jnp.float32) * 0.1
    b3 = jnp.zeros((1, feature_dim), jnp.float32)
    return (w1, b1, g1, bt1, w2, b2, g2, bt2, w3, b3)


def _ln_f32(x, gamma, beta):
    mean = jnp.mean(x, axis=-1, keepdims=True)
    var = jnp.mean((x - mean) ** 2, axis=-1, keepdims=True)
    return (x - mean) * jax.lax.rsqrt(var + LN_EPS) * gamma + beta


def reference_forward(obs, action, params):
    """Pure-JAX reference mirroring the kernel's mixed precision (bf16 MXU
    operands, f32 accumulation and f32 LayerNorm/activation math)."""
    (w1, b1, g1, bt1, w2, b2, g2, bt2, w3, b3) = params
    bf = lambda x: x.astype(jnp.bfloat16)
    F = w1.shape[1]
    h_pre = jnp.dot(bf(obs), bf(w1), preferred_element_type=jnp.float32) + b1
    h = jnp.tanh(_ln_f32(h_pre, g1, bt1))
    z_pre = (jnp.dot(bf(h), bf(w2[:F, :]), preferred_element_type=jnp.float32)
             + jnp.dot(bf(action), bf(w2[F:, :]), preferred_element_type=jnp.float32)
             + b2)
    z = jnp.maximum(_ln_f32(z_pre, g2, bt2), 0.0)
    return jnp.dot(bf(z), bf(w3), preferred_element_type=jnp.float32) + b3


if __name__ == "__main__":
    key = jax.random.PRNGKey(0)
    k_obs, k_act, k_param = jax.random.split(key, 3)

    # Small but representative shapes (feature_dim=50 exercises lane padding,
    # repr_dim=1024 with tk=256 exercises the K-accumulation grid axis,
    # B=16 with tb=8 exercises the parallel batch axis).
    B, repr_dim, action_dim, feature_dim, hidden_dim = 16, 1024, 4, 50, 64

    obs = jax.random.normal(k_obs, (B, repr_dim), jnp.float32)
    action = jax.random.normal(k_act, (B, action_dim), jnp.float32)
    params = init_params(k_param, repr_dim, action_dim, feature_dim, hidden_dim)

    out = dynamics_model_forward(obs, action, params, tb=8, tk=256)
    out = jax.block_until_ready(out)

    ref = reference_forward(obs, action, params)
    assert out.shape == (B, feature_dim)
    assert jnp.allclose(out, ref, atol=2e-3, rtol=2e-3), "mismatch vs reference"

    print("KERNEL_OK")
</pallas_src>

<mosaic_0001>
module attributes {stable_mosaic.version = 11 : i64} {
  func.func @dynamics_kernel(%arg0: i32, %arg1: i32, %arg2: memref<8x256xbf16, #tpu.memory_space<vmem>>, %arg3: memref<8x128xbf16, #tpu.memory_space<vmem>>, %arg4: memref<256x128xbf16, #tpu.memory_space<vmem>>, %arg5: memref<1x128xf32, #tpu.memory_space<vmem>>, %arg6: memref<1x128xf32, #tpu.memory_space<vmem>>, %arg7: memref<1x128xf32, #tpu.memory_space<vmem>>, %arg8: memref<128x128xbf16, #tpu.memory_space<vmem>>, %arg9: memref<128x128xbf16, #tpu.memory_space<vmem>>, %arg10: memref<1x128xf32, #tpu.memory_space<vmem>>, %arg11: memref<1x128xf32, #tpu.memory_space<vmem>>, %arg12: memref<1x128xf32, #tpu.memory_space<vmem>>, %arg13: memref<128x128xbf16, #tpu.memory_space<vmem>>, %arg14: memref<1x128xf32, #tpu.memory_space<vmem>>, %arg15: memref<8x128xf32, #tpu.memory_space<vmem>>, %arg16: memref<8x128xf32, #tpu.memory_space<vmem>>) attributes {dimension_semantics = [#tpu.dimension_semantics<parallel>, #tpu.dimension_semantics<arbitrary>], iteration_bounds = array<i64: 2, 4>, scalar_prefetch = 0 : i64, scratch_operands = 1 : i64, tpu.core_type = #tpu.core_type<tc>, window_params = [{transform_indices = @transform_0, window_bounds = array<i64: 8, 256>}, {transform_indices = @transform_1, window_bounds = array<i64: 8, 128>}, {transform_indices = @transform_2, window_bounds = array<i64: 256, 128>}, {pipeline_mode = #tpu.pipeline_mode<synchronous>, transform_indices = @transform_3, window_bounds = array<i64: 1, 128>}, {pipeline_mode = #tpu.pipeline_mode<synchronous>, transform_indices = @transform_4, window_bounds = array<i64: 1, 128>}, {pipeline_mode = #tpu.pipeline_mode<synchronous>, transform_indices = @transform_5, window_bounds = array<i64: 1, 128>}, {pipeline_mode = #tpu.pipeline_mode<synchronous>, transform_indices = @transform_6, window_bounds = array<i64: 128, 128>}, {pipeline_mode = #tpu.pipeline_mode<synchronous>, transform_indices = @transform_7, window_bounds = array<i64: 128, 128>}, {pipeline_mode = #tpu.pipeline_mode<synchronous>, transform_indices = @transform_8, window_bounds = array<i64: 1, 128>}, {pipeline_mode = #tpu.pipeline_mode<synchronous>, transform_indices = @transform_9, window_bounds = array<i64: 1, 128>}, {pipeline_mode = #tpu.pipeline_mode<synchronous>, transform_indices = @transform_10, window_bounds = array<i64: 1, 128>}, {pipeline_mode = #tpu.pipeline_mode<synchronous>, transform_indices = @transform_11, window_bounds = array<i64: 128, 128>}, {pipeline_mode = #tpu.pipeline_mode<synchronous>, transform_indices = @transform_12, window_bounds = array<i64: 1, 128>}, {transform_indices = @transform_13, window_bounds = array<i64: 8, 128>}]} {
    %c0_i32 = arith.constant 0 : i32
    %0 = arith.cmpi eq, %arg1, %c0_i32 : i32
    %1 = arith.extui %0 : i1 to i32
    %c0_i32_0 = arith.constant 0 : i32
    %2 = arith.cmpi ne, %1, %c0_i32_0 : i32
    scf.if %2 {
      %c0_9 = arith.constant 0 : index
      %c0_10 = arith.constant 0 : index
      %12 = vector.load %arg5[%c0_9, %c0_10] : memref<1x128xf32, #tpu.memory_space<vmem>>, vector<1x128xf32>
      %13 = vector.shape_cast %12 : vector<1x128xf32> to vector<1x128xf32>
      %14 = vector.broadcast %13 : vector<1x128xf32> to vector<8x128xf32>
      %c0_11 = arith.constant 0 : index
      %c0_12 = arith.constant 0 : index
      %15 = vector.load %arg16[%c0_11, %c0_12] : memref<8x128xf32, #tpu.memory_space<vmem>>, vector<8x128xf32>
      tpu.vector_store %arg16[%c0_11, %c0_12], %14 {strides = array<i32>} : memref<8x128xf32, #tpu.memory_space<vmem>>, vector<8x128xf32>,
    } else {
    }
    %c0 = arith.constant 0 : index
    %c0_1 = arith.constant 0 : index
    %3 = vector.load %arg16[%c0, %c0_1] : memref<8x128xf32, #tpu.memory_space<vmem>>, vector<8x128xf32>
    %c0_2 = arith.constant 0 : index
    %c0_3 = arith.constant 0 : index
    %4 = vector.load %arg2[%c0_2, %c0_3] : memref<8x256xbf16, #tpu.memory_space<vmem>>, vector<8x256xbf16>
    %c0_4 = arith.constant 0 : index
    %c0_5 = arith.constant 0 : index
    %5 = vector.load %arg4[%c0_4, %c0_5] : memref<256x128xbf16, #tpu.memory_space<vmem>>, vector<256x128xbf16>
    %cst = arith.constant dense<0.000000e+00> : vector<8x128xf32>
    %6 = tpu.matmul %4, %5, %cst {dimension_numbers = #tpu.dot_dimension_numbers<[1], [0], [0], [1], [0, 0, 1, 1], [], []>} : vector<8x256xbf16>, vector<256x128xbf16>, vector<8x128xf32> -> vector<8x128xf32>
    %7 = arith.addf %3, %6 : vector<8x128xf32>
    %c0_6 = arith.constant 0 : index
    %c0_7 = arith.constant 0 : index
    %8 = vector.load %arg16[%c0_6, %c0_7] : memref<8x128xf32, #tpu.memory_space<vmem>>, vector<8x128xf32>
    tpu.vector_store %arg16[%c0_6, %c0_7], %7 {strides = array<i32>} : memref<8x128xf32, #tpu.memory_space<vmem>>, vector<8x128xf32>,
    %c3_i32 = arith.constant 3 : i32
    %9 = arith.cmpi eq, %arg1, %c3_i32 : i32
    %10 = arith.extui %9 : i1 to i32
    %c0_i32_8 = arith.constant 0 : i32
    %11 = arith.cmpi ne, %10, %c0_i32_8 : i32
    scf.if %11 {
      %c0_9 = arith.constant 0 : index
      %c0_10 = arith.constant 0 : index
      %12 = vector.load %arg16[%c0_9, %c0_10] : memref<8x128xf32, #tpu.memory_space<vmem>>, vector<8x128xf32>
      %c0_11 = arith.constant 0 : index
      %c0_12 = arith.constant 0 : index
      %13 = vector.load %arg6[%c0_11, %c0_12] : memref<1x128xf32, #tpu.memory_space<vmem>>, vector<1x128xf32>
      %c0_13 = arith.constant 0 : index
      %c0_14 = arith.constant 0 : index
      %14 = vector.load %arg7[%c0_13, %c0_14] : memref<1x128xf32, #tpu.memory_space<vmem>>, vector<1x128xf32>
      %15 = tpu.iota {dimensions = array<i32: 1>} : vector<8x128xi32>
      %c50_i32 = arith.constant 50 : i32
      %16 = vector.broadcast %c50_i32 : i32 to vector<8x128xi32>
      %17 = arith.cmpi slt, %15, %16 : vector<8x128xi32>
      %18 = arith.extui %17 : vector<8x128xi1> to vector<8x128xi32>
      %19 = arith.sitofp %18 : vector<8x128xi32> to vector<8x128xf32>
      %20 = arith.mulf %12, %19 : vector<8x128xf32>
      %cst_15 = arith.constant dense<0.000000e+00> : vector<8xf32>
      %21 = vector.multi_reduction <add>, %20, %cst_15 [1] : vector<8x128xf32> to vector<8xf32>
      %22 = vector.shape_cast %21 : vector<8xf32> to vector<8x1xf32>
      %cst_16 = arith.constant 5.000000e+01 : f32
      %23 = vector.broadcast %cst_16 : f32 to vector<8x1xf32>
      %24 = arith.divf %22, %23 : vector<8x1xf32>
      %25 = vector.broadcast %24 : vector<8x1xf32> to vector<8x128xf32>
      %26 = arith.subf %12, %25 : vector<8x128xf32>
      %27 = arith.mulf %26, %19 : vector<8x128xf32>
      %28 = arith.mulf %27, %27 : vector<8x128xf32>
      %cst_17 = arith.constant dense<0.000000e+00> : vector<8xf32>
      %29 = vector.multi_reduction <add>, %28, %cst_17 [1] : vector<8x128xf32> to vector<8xf32>
      %30 = vector.shape_cast %29 : vector<8xf32> to vector<8x1xf32>
      %cst_18 = arith.constant 5.000000e+01 : f32
      %31 = vector.broadcast %cst_18 : f32 to vector<8x1xf32>
      %32 = arith.divf %30, %31 : vector<8x1xf32>
      %cst_19 = arith.constant 9.99999974E-6 : f32
      %33 = vector.broadcast %cst_19 : f32 to vector<8x1xf32>
      %34 = arith.addf %32, %33 : vector<8x1xf32>
      %35 = math.rsqrt %34 : vector<8x1xf32>
      %36 = vector.broadcast %24 : vector<8x1xf32> to vector<8x128xf32>
      %37 = arith.subf %12, %36 : vector<8x128xf32>
      %38 = vector.broadcast %35 : vector<8x1xf32> to vector<8x128xf32>
      %39 = arith.mulf %37, %38 : vector<8x128xf32>
      %40 = vector.broadcast %13 : vector<1x128xf32> to vector<8x128xf32>
      %41 = arith.mulf %39, %40 : vector<8x128xf32>
      %42 = vector.broadcast %14 : vector<1x128xf32> to vector<8x128xf32>
      %43 = arith.addf %41, %42 : vector<8x128xf32>
      %44 = math.tanh %43 : vector<8x128xf32>
      %45 = arith.truncf %44 : vector<8x128xf32> to vector<8x128xbf16>
      %c0_20 = arith.constant 0 : index
      %c0_21 = arith.constant 0 : index
      %46 = vector.load %arg8[%c0_20, %c0_21] : memref<128x128xbf16, #tpu.memory_space<vmem>>, vector<128x128xbf16>
      %cst_22 = arith.constant dense<0.000000e+00> : vector<8x128xf32>
      %47 = tpu.matmul %45, %46, %cst_22 {dimension_numbers = #tpu.dot_dimension_numbers<[1], [0], [0], [1], [0, 0, 1, 1], [], []>} : vector<8x128xbf16>, vector<128x128xbf16>, vector<8x128xf32> -> vector<8x128xf32>
      %c0_23 = arith.constant 0 : index
      %c0_24 = arith.constant 0 : index
      %48 = vector.load %arg3[%c0_23, %c0_24] : memref<8x128xbf16, #tpu.memory_space<vmem>>, vector<8x128xbf16>
      %c0_25 = arith.constant 0 : index
      %c0_26 = arith.constant 0 : index
      %49 = vector.load %arg9[%c0_25, %c0_26] : memref<128x128xbf16, #tpu.memory_space<vmem>>, vector<128x128xbf16>
      %cst_27 = arith.constant dense<0.000000e+00> : vector<8x128xf32>
      %50 = tpu.matmul %48, %49, %cst_27 {dimension_numbers = #tpu.dot_dimension_numbers<[1], [0], [0], [1], [0, 0, 1, 1], [], []>} : vector<8x128xbf16>, vector<128x128xbf16>, vector<8x128xf32> -> vector<8x128xf32>
      %51 = arith.addf %47, %50 : vector<8x128xf32>
      %c0_28 = arith.constant 0 : index
      %c0_29 = arith.constant 0 : index
      %52 = vector.load %arg10[%c0_28, %c0_29] : memref<1x128xf32, #tpu.memory_space<vmem>>, vector<1x128xf32>
      %53 = vector.broadcast %52 : vector<1x128xf32> to vector<8x128xf32>
      %54 = arith.addf %51, %53 : vector<8x128xf32>
      %c0_30 = arith.constant 0 : index
      %c0_31 = arith.constant 0 : index
      %55 = vector.load %arg11[%c0_30, %c0_31] : memref<1x128xf32, #tpu.memory_space<vmem>>, vector<1x128xf32>
      %c0_32 = arith.constant 0 : index
      %c0_33 = arith.constant 0 : index
      %56 = vector.load %arg12[%c0_32, %c0_33] : memref<1x128xf32, #tpu.memory_space<vmem>>, vector<1x128xf32>
      %57 = tpu.iota {dimensions = array<i32: 1>} : vector<8x128xi32>
      %c64_i32 = arith.constant 64 : i32
      %58 = vector.broadcast %c64_i32 : i32 to vector<8x128xi32>
      %59 = arith.cmpi slt, %57, %58 : vector<8x128xi32>
      %60 = arith.extui %59 : vector<8x128xi1> to vector<8x128xi32>
      %61 = arith.sitofp %60 : vector<8x128xi32> to vector<8x128xf32>
      %62 = arith.mulf %54, %61 : vector<8x128xf32>
      %cst_34 = arith.constant dense<0.000000e+00> : vector<8xf32>
      %63 = vector.multi_reduction <add>, %62, %cst_34 [1] : vector<8x128xf32> to vector<8xf32>
      %64 = vector.shape_cast %63 : vector<8xf32> to vector<8x1xf32>
      %cst_35 = arith.constant 6.400000e+01 : f32
      %65 = vector.broadcast %cst_35 : f32 to vector<8x1xf32>
      %66 = arith.divf %64, %65 : vector<8x1xf32>
      %67 = vector.broadcast %66 : vector<8x1xf32> to vector<8x128xf32>
      %68 = arith.subf %54, %67 : vector<8x128xf32>
      %69 = arith.mulf %68, %61 : vector<8x128xf32>
      %70 = arith.mulf %69, %69 : vector<8x128xf32>
      %cst_36 = arith.constant dense<0.000000e+00> : vector<8xf32>
      %71 = vector.multi_reduction <add>, %70, %cst_36 [1] : vector<8x128xf32> to vector<8xf32>
      %72 = vector.shape_cast %71 : vector<8xf32> to vector<8x1xf32>
      %cst_37 = arith.constant 6.400000e+01 : f32
      %73 = vector.broadcast %cst_37 : f32 to vector<8x1xf32>
      %74 = arith.divf %72, %73 : vector<8x1xf32>
      %cst_38 = arith.constant 9.99999974E-6 : f32
      %75 = vector.broadcast %cst_38 : f32 to vector<8x1xf32>
      %76 = arith.addf %74, %75 : vector<8x1xf32>
      %77 = math.rsqrt %76 : vector<8x1xf32>
      %78 = vector.broadcast %66 : vector<8x1xf32> to vector<8x128xf32>
      %79 = arith.subf %54, %78 : vector<8x128xf32>
      %80 = vector.broadcast %77 : vector<8x1xf32> to vector<8x128xf32>
      %81 = arith.mulf %79, %80 : vector<8x128xf32>
      %82 = vector.broadcast %55 : vector<1x128xf32> to vector<8x128xf32>
      %83 = arith.mulf %81, %82 : vector<8x128xf32>
      %84 = vector.broadcast %56 : vector<1x128xf32> to vector<8x128xf32>
      %85 = arith.addf %83, %84 : vector<8x128xf32>
      %cst_39 = arith.constant 0.000000e+00 : f32
      %86 = vector.broadcast %cst_39 : f32 to vector<8x128xf32>
      %87 = arith.maximumf %85, %86 : vector<8x128xf32>
      %88 = arith.truncf %87 : vector<8x128xf32> to vector<8x128xbf16>
      %c0_40 = arith.constant 0 : index
      %c0_41 = arith.constant 0 : index
      %89 = vector.load %arg13[%c0_40, %c0_41] : memref<128x128xbf16, #tpu.memory_space<vmem>>, vector<128x128xbf16>
      %cst_42 = arith.constant dense<0.000000e+00> : vector<8x128xf32>
      %90 = tpu.matmul %88, %89, %cst_42 {dimension_numbers = #tpu.dot_dimension_numbers<[1], [0], [0], [1], [0, 0, 1, 1], [], []>} : vector<8x128xbf16>, vector<128x128xbf16>, vector<8x128xf32> -> vector<8x128xf32>
      %c0_43 = arith.constant 0 : index
      %c0_44 = arith.constant 0 : index
      %91 = vector.load %arg14[%c0_43, %c0_44] : memref<1x128xf32, #tpu.memory_space<vmem>>, vector<1x128xf32>
      %92 = vector.broadcast %91 : vector<1x128xf32> to vector<8x128xf32>
      %93 = arith.addf %90, %92 : vector<8x128xf32>
      %c0_45 = arith.constant 0 : index
      %c0_46 = arith.constant 0 : index
      %94 = vector.load %arg15[%c0_45, %c0_46] : memref<8x128xf32, #tpu.memory_space<vmem>>, vector<8x128xf32>
      tpu.vector_store %arg15[%c0_45, %c0_46], %93 {strides = array<i32>} : memref<8x128xf32, #tpu.memory_space<vmem>>, vector<8x128xf32>,
    } else {
    }
    return
  }
  func.func @transform_0(%arg0: i32, %arg1: i32) -> (i32, i32) {
    %c0_i32 = arith.constant 0 : i32
    return %arg0, %arg1 : i32, i32
  }
  func.func @transform_1(%arg0: i32, %arg1: i32) -> (i32, i32) {
    %c0_i32 = arith.constant 0 : i32
    %c0_i32_0 = arith.constant 0 : i32
    return %arg0, %c0_i32 : i32, i32
  }
  func.func @transform_2(%arg0: i32, %arg1: i32) -> (i32, i32) {
    %c0_i32 = arith.constant 0 : i32
    %c0_i32_0 = arith.constant 0 : i32
    return %arg1, %c0_i32 : i32, i32
  }
  func.func @transform_3(%arg0: i32, %arg1: i32) -> (i32, i32) {
    %c0_i32 = arith.constant 0 : i32
    %c0_i32_0 = arith.constant 0 : i32
    %c0_i32_1 = arith.constant 0 : i32
    return %c0_i32, %c0_i32_0 : i32, i32
  }
  func.func @transform_4(%arg0: i32, %arg1: i32) -> (i32, i32) {
    %c0_i32 = arith.constant 0 : i32
    %c0_i32_0 = arith.constant 0 : i32
    %c0_i32_1 = arith.constant 0 : i32
    return %c0_i32, %c0_i32_0 : i32, i32
  }
  func.func @transform_5(%arg0: i32, %arg1: i32) -> (i32, i32) {
    %c0_i32 = arith.constant 0 : i32
    %c0_i32_0 = arith.constant 0 : i32
    %c0_i32_1 = arith.constant 0 : i32
    return %c0_i32, %c0_i32_0 : i32, i32
  }
  func.func @transform_6(%arg0: i32, %arg1: i32) -> (i32, i32) {
    %c0_i32 = arith.constant 0 : i32
    %c0_i32_0 = arith.constant 0 : i32
    %c0_i32_1 = arith.constant 0 : i32
    return %c0_i32, %c0_i32_0 : i32, i32
  }
  func.func @transform_7(%arg0: i32, %arg1: i32) -> (i32, i32) {
    %c0_i32 = arith.constant 0 : i32
    %c0_i32_0 = arith.constant 0 : i32
    %c0_i32_1 = arith.constant 0 : i32
    return %c0_i32, %c0_i32_0 : i32, i32
  }
  func.func @transform_8(%arg0: i32, %arg1: i32) -> (i32, i32) {
    %c0_i32 = arith.constant 0 : i32
    %c0_i32_0 = arith.constant 0 : i32
    %c0_i32_1 = arith.constant 0 : i32
    return %c0_i32, %c0_i32_0 : i32, i32
  }
  func.func @transform_9(%arg0: i32, %arg1: i32) -> (i32, i32) {
    %c0_i32 = arith.constant 0 : i32
    %c0_i32_0 = arith.constant 0 : i32
    %c0_i32_1 = arith.constant 0 : i32
    return %c0_i32, %c0_i32_0 : i32, i32
  }
  func.func @transform_10(%arg0: i32, %arg1: i32) -> (i32, i32) {
    %c0_i32 = arith.constant 0 : i32
    %c0_i32_0 = arith.constant 0 : i32
    %c0_i32_1 = arith.constant 0 : i32
    return %c0_i32, %c0_i32_0 : i32, i32
  }
  func.func @transform_11(%arg0: i32, %arg1: i32) -> (i32, i32) {
    %c0_i32 = arith.constant 0 : i32
    %c0_i32_0 = arith.constant 0 : i32
    %c0_i32_1 = arith.constant 0 : i32
    return %c0_i32, %c0_i32_0 : i32, i32
  }
  func.func @transform_12(%arg0: i32, %arg1: i32) -> (i32, i32) {
    %c0_i32 = arith.constant 0 : i32
    %c0_i32_0 = arith.constant 0 : i32
    %c0_i32_1 = arith.constant 0 : i32
    return %c0_i32, %c0_i32_0 : i32, i32
  }
  func.func @transform_13(%arg0: i32, %arg1: i32) -> (i32, i32) {
    %c0_i32 = arith.constant 0 : i32
    %c0_i32_0 = arith.constant 0 : i32
    return %arg0, %c0_i32 : i32, i32
  }
}

</mosaic_0001>

<bundles_post_ra>
// kernel: tpu_custom_call.1
= control target key start
LH: loop header
LB: loop body
LE: loop exit
PB: predicated region body
PF: predicated region fallthrough
CT: control target
= control target key end

     0   :  { %s2773_s0 = inlined_call_operand.hbm [shape: bf16[16,1024], index: 0, kind: input, shape index: {}]   ;;  %s2774_s1 = inlined_call_operand.hbm [shape: bf16[16,128], index: 1, kind: input, shape index: {}]   ;;  %s2775_s2 = inlined_call_operand.hbm [shape: bf16[1024,128], index: 2, kind: input, shape index: {}]   ;;  %s2776_s3 = inlined_call_operand.vmem [shape: f32[1,128], index: 3, kind: input, shape index: {}]   ;;  %s2777_s4 = inlined_call_operand.vmem [shape: f32[1,128], index: 4, kind: input, shape index: {}]   ;;  %s2778_s5 = inlined_call_operand.vmem [shape: f32[1,128], index: 5, kind: input, shape index: {}]   ;;  %s2779_s6 = inlined_call_operand.hbm [shape: bf16[128,128], index: 6, kind: input, shape index: {}]   ;;  %s2780_s7 = inlined_call_operand.hbm [shape: bf16[128,128], index: 7, kind: input, shape index: {}]   ;;  %s2781_s8 = inlined_call_operand.vmem [shape: f32[1,128], index: 8, kind: input, shape index: {}]   ;;  %s2782_s9 = inlined_call_operand.vmem [shape: f32[1,128], index: 9, kind: input, shape index: {}]   ;;  %s2783_s10 = inlined_call_operand.vmem [shape: f32[1,128], index: 10, kind: input, shape index: {}]   ;;  %s2784_s11 = inlined_call_operand.hbm [shape: bf16[128,128], index: 11, kind: input, shape index: {}]   ;;  %s2785_s12 = inlined_call_operand.vmem [shape: f32[1,128], index: 12, kind: input, shape index: {}]   ;;  %s2786_s13 = inlined_call_operand.hbm [shape: f32[16,128], index: 13, kind: output, shape index: {}]  }
   0x1   :  { %2821 = sst [smem:[#allocation36_spill]] %s2774_s1 }
   0x2   :  { %2822 = sst [smem:[#allocation37_spill]] %s2776_s3 }
   0x3   :  { %2823 = sst [smem:[#allocation38_spill]] %s2777_s4 }
   0x4   :  { %2824 = sst [smem:[#allocation39_spill]] %s2778_s5 }
   0x5   :  { %2825 = sst [smem:[#allocation40_spill]] %s2779_s6 }
   0x6   :  { %2826 = sst [smem:[#allocation41_spill]] %s2780_s7 }
   0x7   :  { %2827 = sst [smem:[#allocation42_spill]] %s2781_s8 }
   0x8   :  { %2828 = sst [smem:[#allocation43_spill]] %s2782_s9 }
   0x9   :  { %2829 = sst [smem:[#allocation44_spill]] %s2783_s10 }
   0xa   :  { %2830 = sst [smem:[#allocation45_spill]] %s2784_s11 }
   0xb   :  { %2831 = sst [smem:[#allocation46_spill]] %s2785_s12 }
   0xc   :  { %2832 = sst [smem:[#allocation47_spill]] %s2786_s13 }
   0xd   :  { %18 = vsyncpa [#allocation4], 0 }
   0xe   :  { %20 = vsyncpa [#allocation4 + $0x1], 0 }
   0xf   :  { %21 = vsyncpa [#allocation7], 0 }
  0x10   :  { %23 = vsyncpa [#allocation7 + $0x1], 0 }
  0x11   :  { %24 = vsyncpa [#allocation10], 0 }
  0x12   :  { %25 = vsyncpa [#allocation13], 0 }
  0x13   :  { %26 = vsyncpa [#allocation5], 0 }
  0x14   :  { %28 = vsyncpa [#allocation5 + $0x1], 0  ;;  %s2190_s25 = smov 0   ;;  %s2192_s26 = smov 0  }
  0x15   :  { %s2194_s27 = smov 0   ;;  %s2196_s28 = smov 0  }
  0x16   :  { %s2198_s29 = smov 0   ;;  %s2200_s30 = smov 0  }
  0x17   :  { %s2202_s14 = smov 0   ;;  %s2204_s15 = smov 0  }
  0x18   :  { %s2206_s16 = smov 0   ;;  %s2208_s17 = smov 0  }
  0x19   :  { %s2210_s18 = smov 0   ;;  %s2212_s19 = smov 0  }
  0x1a   :  { %s2214_s20 = smov 0   ;;  %s2216_s21 = smov 0  }
  0x1b LB: > { %2833 = sst [smem:[#allocation21_spill]] %s2059_s26  ;;  %s2261_s22 = sadd.s32 4294967295, %s2107_s21   ;;  %s2107_s21 = sphi %s2216_s21, %s34_s21   ;;  %s2103_s20 = sphi %s2214_s20, %s2926_s20   ;;  %s2099_s19 = sphi %s2212_s19, %s2925_s19   ;;  %s2095_s18 = sphi %s2210_s18, %s2924_s18   ;;  %s2091_s17 = sphi %s2208_s17, %s2923_s17   ;;  %s2087_s16 = sphi %s2206_s16, %s2922_s16   ;;  %s2083_s15 = sphi %s2204_s15, %s2921_s15   ;;  %s2079_s14 = sphi %s2202_s14, %s2914_s14   ;;  %s2075_s30 = sphi %s2200_s30, %s2920_s30   ;;  %s2071_s29 = sphi %s2198_s29, %s2919_s29   ;;  %s2067_s28 = sphi %s2196_s28, %s2913_s28   ;;  %s2063_s27 = sphi %s2194_s27, %s2918_s27   ;;  %s2059_s26 = sphi %s2192_s26, %s2917_s26   ;;  %s2055_s25 = sphi %s2190_s25, %s2911_s25  }
  0x1c   : > { %2834 = sst [smem:[#allocation22_spill]] %s2067_s28  ;;  %p1363_p0 = scmp.ge.s32.totalorder %s2107_s21, 1 }
  0x1d   : > { %2835 = sst [smem:[#allocation23_spill]] %s2071_s29  ;;  %p2788_p1 = scmp.eq.s32.totalorder %s2261_s22, 0 }
  0x1e   : > { %2836 = sst [smem:[#allocation24_spill]] %s2083_s15  ;;  %p367_p2 = scmp.lt.s32.totalorder %s2107_s21, 9 }
  0x1f   : > { %2837 = sst [smem:[#allocation25_spill]] %s2091_s17  ;;  %s2109_s24 = smov [#allocation9]  }
  0x20   : > { %2838 = sst [smem:[#allocation26_spill]] %s2095_s18  ;;  %p2266_p3 = pnand %p1363_p0, %p367_p2 }
  0x21   : > { %2839 = sst [smem:[#allocation27_spill]] %s2261_s22  ;;  %s388_s13 = sshll.u32 %s2109_s24, 4  ;;  %s389_s13 = int_to_ptr.vmem [resolvable:$true] %s388_s13 }
  0x22   : > { %s2840_s23 = scalar_select %p2266_p3, 1, 0 }
  0x23   : > { %p1572_p4 = pneg %p2266_p3  ;;  %s2842_s6 = sld [smem:[#allocation40_spill]] }
  0x25   : > { %p2274_p5 = pnand %p1572_p4, %p2788_p1 }
  0x27   : > { %s2841_s18 = scalar_select %p2274_p5, 1, 0 }
  0x28   : > { %p2286_p7 = pneg %p2274_p5 }
  0x29   : > { %s1771_s9 = scalar_lea.hbm %s2842_s6, 1024 }
  0x2a   : > { %p1772_p6 = scmp.ne.s32.totalorder %s2842_s6, %s1771_s9  ;;  %p1778_p10 = scmp.lt.u32.totalorder %s1771_s9, %s2842_s6 }
  0x2b   : > { %s2843_s24 = scalar_select %p2286_p7, 1, 0 }
  0x2c   : > { %p1774_p8 = pnand %p2286_p7, %p1772_p6 }
  0x2e   : > { %p1775_p9 = pneg %p1774_p8 }
  0x30   : > { %p1780_p11 = pnand %p1778_p10, %p1775_p9 }
  0x32   : > { %1783 = shalt.err (!%p1780_p11)
}
  0x33   : > { %s1784_s10 = scalar_lea.vmem %s389_s13, 1024  ;;  %p1792_p2 = scmp.lt.s32.totalorder %s389_s13, %s389_s13 }
  0x34   : > { %p1785_p12 = scmp.ne.s32.totalorder %s389_s13, %s1784_s10  ;;  %p1793_p4 = scmp.lt.s32.totalorder %s1784_s10, %s1784_s10 }
  0x36   : > { %p1787_p13 = pnand %p1785_p12, %p2286_p7  ;;  %p1794_p1 = por %p1793_p4, %p1792_p2 }
  0x38   : > { %p1788_p0 = pneg %p1787_p13 }
  0x3a   : > { %p1795_p3 = pnand %p1794_p1, %p1788_p0 }
  0x3c   : > { %1798 = shalt.err (!%p1795_p3)
}
  0x3d   : > { %s2794_s5 = smov 64   ;;  %s2796_s3 = smov 4  }
  0x3e   : > { %1575 = dma.hbm_to_vmem [thread:$0]  (!%p2274_p5), %s2842_s6, 1024, %s389_s13, [#allocation10], %s2794_s5, %s2794_s5, %s2796_s3  }
  0x3f   : > { %s1362_s9 = sadd.s32 4294967294, %s2107_s21   ;;  %p2806_p1 = scmp.eq.s32.totalorder %s2107_s21, 0 }
  0x40   : > { %p88_p3 = scmp.ne.s32.totalorder %s2075_s30, %s2071_s29  ;;  %p94_p6 = scmp.ne.s32.totalorder %s2071_s29, %s2067_s28 }
  0x41   : > { %p114_p8 = scmp.ne.s32.totalorder %s2063_s27, %s2059_s26  ;;  %p120_p10 = scmp.ne.s32.totalorder %s2059_s26, %s2055_s25 }
  0x42   : > { %p2317_p9 = por %p88_p3, %p2806_p1  ;;  %p2845_p11 = scmp.eq.s32.totalorder %s2261_s22, 0 }
  0x43   : > { %p2331_p13 = por %p114_p8, %p2806_p1  ;;  %p354_p4 = scmp.eq.s32.totalorder %s2261_s22, 7 }
  0x44   : > { %s2844_s17 = scalar_select %p2317_p9, 1, 0 }
  0x45   : > { %p2325_p12 = por %p94_p6, %p2845_p11  ;;  %p2849_p0 = pmov %p2845_p11 }
  0x46   : > { %p360_p5 = scmp.eq.s32.totalorder %s1362_s9, 7  ;;  %p2805_p7 = scmp.lt.s32.totalorder %s2107_s21, 8 }
  0x47   : > { %s2846_s13 = scalar_select %p2325_p12, 1, 0 }
  0x48   : > { %p2337_p2 = por %p120_p10, %p2849_p0  ;;  %p2343_p9 = por %p354_p4, %p88_p3 }
  0x49   : > { %2847 = sst [smem:[#allocation28_spill]] %s2846_s13  ;;  %s461_s10 = sand.u32 1, %s2107_s21  }
  0x4a   : > { %s2850_s8 = scalar_select %p2337_p2, 1, 0 }
  0x4b   : > { %s2852_s25 = scalar_select %p2343_p9, 1, 0 }
  0x4c   : > { %2851 = sst [smem:[#allocation29_spill]] %s2850_s8  ;;  %p2348_p11 = por %p360_p5, %p94_p6 }
  0x4d   : > { %2853 = sst [smem:[#allocation30_spill]] %s2852_s25  ;;  %s463_s5 = sand.u32 1, %s2075_s30  }
  0x4e   : > { %s2854_s12 = scalar_select %p2348_p11, 1, 0 }
  0x4f   : > { %s1373_s3 = sshll.u32 %s2103_s20, 6  ;;  %s1372_s6 = sshll.u32 %s463_s5, 2 }
  0x50   : > { %2855 = sst [smem:[#allocation31_spill]] %s2854_s12  ;;  %s2856_s1 = sld [smem:[#allocation36_spill]] }
  0x51   : > { %p2857_p8 = scmp.ne.s32.totalorder %s2844_s17, 0  ;;  %s465_s12 = scalar_lea.vmem [#allocation6], %s1372_s6 }
  0x52   : > { %s472_s25 = sshll.u32 %s465_s12, 4  ;;  %p2371_p5 = pnand %p2805_p7, %p2331_p13  ;;  %s2375_s25 = int_to_ptr.vmem [resolvable:$true] %s472_s25 }
  0x53   : > { %p2363_p3 = pnand %p2805_p7, %p2857_p8  ;;  %s2377_s28 = scalar_lea.sflag [#allocation7], %s461_s10 }
  0x54   : > { %s2859_s26 = scalar_select %p2371_p5, 1, 0 }
  0x55   : > { %p1801_p10 = pneg %p2363_p3 }
  0x56   : > { %s2357_s13 = scalar_lea.hbm %s2856_s1, %s1373_s3  ;;  %s1804_s3 = scalar_lea.hbm %s2856_s1, 128 }
  0x57   : > { %s1799_s17 = scalar_lea.hbm %s2357_s13, 64  ;;  %p1805_p13 = scmp.lt.u32.totalorder %s2357_s13, %s2856_s1 }
  0x58   : > { %p1800_p6 = scmp.ne.s32.totalorder %s2357_s13, %s1799_s17  ;;  %p1806_p8 = scmp.lt.u32.totalorder %s1804_s3, %s1799_s17 }
  0x59   : > { %p1808_p1 = scmp.lt.u32.totalorder %s1799_s17, %s2357_s13 }
  0x5a   : > { %p1802_p0 = pnand %p1801_p10, %p1800_p6  ;;  %p1807_p7 = por %p1806_p8, %p1805_p13 }
  0x5c   : > { %p1803_p4 = pneg %p1802_p0  ;;  %p1809_p11 = por %p1808_p1, %p1807_p7 }
  0x5e   : > { %p1810_p9 = pnand %p1809_p11, %p1803_p4 }
  0x60   : > { %1813 = shalt.err (!%p1810_p9)
}
  0x61   : > { %s1814_s10 = scalar_lea.vmem %s2375_s25, 64  ;;  %s2112_s6 = smov [#allocation6]  }
  0x62   : > { %p1815_p6 = scmp.ne.s32.totalorder %s2375_s25, %s1814_s10  ;;  %s1819_s5 = sshll.u32 %s2112_s6, 4  ;;  %s1820_s5 = int_to_ptr.vmem [resolvable:$false] %s1819_s5 }
  0x63   : > { %s1821_s12 = scalar_lea.vmem %s1820_s5, 128  ;;  %p1822_p12 = scmp.lt.s32.totalorder %s2375_s25, %s1820_s5 }
  0x64   : > { %p1817_p0 = pnand %p1815_p6, %p1801_p10  ;;  %p1823_p13 = scmp.lt.s32.totalorder %s1821_s12, %s1814_s10 }
  0x66   : > { %p1818_p2 = pneg %p1817_p0  ;;  %p1824_p8 = por %p1823_p13, %p1822_p12 }
  0x68   : > { %p1825_p7 = pnand %p1824_p8, %p1818_p2 }
  0x6a   : > { %1828 = shalt.err (!%p1825_p7)
}
  0x6b   : > { %1588 = dma.hbm_to_vmem [thread:$0]  (!%p2363_p3), %s2357_s13, 64, %s2375_s25, %s2377_s28  }
  0x6c   : > { %s2113_s17 = smov [#allocation11]   ;;  %s2114_s4 = smov [#allocation12]  }
  0x6d   : > { %s401_s3 = sshll.u32 %s2113_s17, 4  ;;  %s423_s1 = sshll.u32 %s2114_s4, 4  ;;  %s402_s3 = int_to_ptr.vmem [resolvable:$true] %s401_s3  ;;  %s424_s1 = int_to_ptr.vmem [resolvable:$true] %s423_s1 }
  0x6e   : > { %s2860_s7 = sld [smem:[#allocation41_spill]]  ;;  %p2861_p9 = scmp.ne.s32.totalorder %s2843_s24, 0 }
  0x74   : > { %s1829_s5 = scalar_lea.hbm %s2860_s7, 1024 }
  0x75   : > { %p1830_p1 = scmp.ne.s32.totalorder %s2860_s7, %s1829_s5  ;;  %p1836_p11 = scmp.lt.u32.totalorder %s1829_s5, %s2860_s7 }
  0x77   : > { %p1832_p12 = pnand %p1830_p1, %p2861_p9 }
  0x79   : > { %p1833_p2 = pneg %p1832_p12 }
  0x7b   : > { %p1838_p3 = pnand %p1836_p11, %p1833_p2 }
  0x7d   : > { %1841 = shalt.err (!%p1838_p3)
}
  0x7e   : > { %s1842_s13 = scalar_lea.vmem %s402_s3, 1024  ;;  %p1850_p0 = scmp.lt.s32.totalorder %s402_s3, %s402_s3 }
  0x7f   : > { %p1843_p10 = scmp.ne.s32.totalorder %s402_s3, %s1842_s13  ;;  %p1851_p13 = scmp.lt.s32.totalorder %s1842_s13, %s1842_s13 }
  0x81   : > { %p1845_p4 = pnand %p1843_p10, %p2861_p9  ;;  %p1852_p8 = por %p1851_p13, %p1850_p0 }
  0x83   : > { %p1846_p6 = pneg %p1845_p4 }
  0x85   : > { %p1853_p7 = pnand %p1852_p8, %p1846_p6 }
  0x87   : > { %1856 = shalt.err (!%p1853_p7)
}
  0x88   : > { %p2862_p1 = scmp.ne.s32.totalorder %s2841_s18, 0  ;;  %s2863_s8 = smov 4  }
  0x89   : > { %s2864_s25 = smov 64   ;;  %s2865_s11 = sld [smem:[#allocation45_spill]] }
  0x8a   : > { %1578 = dma.hbm_to_vmem [thread:$0]  (!%p2862_p1), %s2860_s7, 1024, %s402_s3, [#allocation10], %s2864_s25, %s2864_s25, %s2863_s8  }
  0x8f   : > { %s1857_s5 = scalar_lea.hbm %s2865_s11, 1024 }
  0x90   : > { %p1858_p12 = scmp.ne.s32.totalorder %s2865_s11, %s1857_s5  ;;  %p1864_p3 = scmp.lt.u32.totalorder %s1857_s5, %s2865_s11 }
  0x92   : > { %p1860_p2 = pnand %p1858_p12, %p2861_p9 }
  0x94   : > { %p1861_p11 = pneg %p1860_p2 }
  0x96   : > { %p1866_p10 = pnand %p1864_p3, %p1861_p11 }
  0x98   : > { %1869 = shalt.err (!%p1866_p10)
}
  0x99   : > { %s1870_s29 = scalar_lea.vmem %s424_s1, 1024  ;;  %p1878_p13 = scmp.lt.s32.totalorder %s424_s1, %s424_s1 }
  0x9a   : > { %p1871_p4 = scmp.ne.s32.totalorder %s424_s1, %s1870_s29  ;;  %p1879_p8 = scmp.lt.s32.totalorder %s1870_s29, %s1870_s29 }
  0x9c   : > { %p1873_p6 = pnand %p1871_p4, %p2861_p9  ;;  %p1880_p7 = por %p1879_p8, %p1878_p13 }
  0x9e   : > { %p1874_p0 = pneg %p1873_p6 }
  0xa0   : > { %p1881_p5 = pnand %p1880_p7, %p1874_p0 }
  0xa2   : > { %1884 = shalt.err (!%p1881_p5)
}
  0xa3   : > { %1581 = dma.hbm_to_vmem [thread:$0]  (!%p2862_p1), %s2865_s11, 1024, %s424_s1, [#allocation13], %s2864_s25, %s2864_s25, %s2863_s8  }
  0xa4   : > { %s43_s18 = sadd.s32 1, %s2099_s19  ;;  %s55_s24 = sadd.s32 1, %s2087_s16 }
  0xa5   : > { %p44_p5 = scmp.ge.s32.totalorder %s43_s18, 4  ;;  %p62_p9 = scmp.ne.s32.totalorder %s2087_s16, %s2083_s15 }
  0xa6   : > { %p68_p12 = scmp.ne.s32.totalorder %s2083_s15, %s2079_s14  ;;  %s2867_s4 = sadd.s32 1, %s2103_s20 }
  0xa7   : > { %s2928_s18 = smov (%p44_p5, %s43_s18), 0  ;;  %s2930_s4 = smov (!%p44_p5, %s2867_s4), %s2103_s20 }
  0xa8   : > { %2866 = sst [smem:[#allocation32_spill]] %s2928_s18  ;;  %s51_s6 = ssub.s32 %s2099_s19, %s2928_s18 }
  0xa9   : > { %p2868_p2 = scmp.eq.s32.totalorder %s2107_s21, 0  ;;  %p48_p1 = scmp.ge.s32.totalorder %s2930_s4, 2 }
  0xaa   : > { %p2870_p3 = scmp.eq.s32.totalorder %s2261_s22, 0  ;;  %p105_p4 = scmp.eq.s32.totalorder %s51_s6, 0 }
  0xab   : > { %p2462_p11 = por %p2868_p2, %p62_p9  ;;  %s107_s5 = sadd.s32 1, %s2063_s27 }
  0xac   : > { %p2468_p10 = por %p2870_p3, %p68_p12  ;;  %s2932_s4 = smov (%p48_p1, %s2930_s4), 0 }
  0xad   : > { %2873 = sst [smem:[#allocation34_spill]] %s2932_s4  ;;  %s50_s12 = ssub.s32 %s2103_s20, %s2932_s4 }
  0xae   : > { %s2871_s14 = scalar_select %p2468_p10, 1, 0 }
  0xaf   : > { %s2476_s10 = scalar_select %p105_p4, %s2063_s27, %s107_s5  }
  0xb0   : > { %2872 = sst [smem:[#allocation33_spill]] %s2871_s14  ;;  %s440_s9 = sand.u32 1, %s2087_s16  }
  0xb1   : > { %2874 = sst [smem:[#allocation35_spill]] %s2476_s10  ;;  %s52_s13 = sor.u32 %s51_s6, %s50_s12 }
  0xb2   : > { %p79_p6 = scmp.eq.s32.totalorder %s50_s12, 0  ;;  %p53_p0 = scmp.eq.s32.totalorder %s52_s13, 0 }
  0xb3   : > { %s2875_s29 = sadd.s32 1, %s2075_s30  ;;  %s1368_s7 = sshll.u32 %s440_s9, 3 }
  0xb4   : > { %s2484_s3 = scalar_select %p79_p6, %s2075_s30, %s2875_s29  }
  0xb5   : > { %s2487_s17 = scalar_select %p53_p0, %s2087_s16, %s55_s24  }
  0xb6   : > { %s1369_s11 = sshll.u32 %s2099_s19, 1  ;;  %s1370_s18 = sshll.u32 %s2103_s20, 3 }
  0xb7   : > { %s450_s22 = sadd.s32 %s1370_s18, %s1369_s11  ;;  %s444_s5 = scalar_lea.vmem [#allocation3], %s1368_s7 }
  0xb8   : > { %s454_s10 = sshll.u32 %s444_s5, 4  ;;  %s1371_s4 = sshll.u32 %s450_s22, 6  ;;  %s2491_s10 = int_to_ptr.vmem [resolvable:$true] %s454_s10 }
  0xb9   : > { %s2496_s6 = scalar_lea.hbm %s2773_s0, %s1371_s4  ;;  %p2876_p13 = scmp.lt.s32.totalorder %s2107_s21, 8 }
  0xba   : > { %s481_s7 = sand.u32 1, %s2063_s27   ;;  %s1442_s11 = sshll.u32 %s2099_s19, 11 }
  0xbb   : > { %p2502_p8 = pnand %p2876_p13, %p2462_p11  ;;  %s2508_s22 = sshll.u32 %s481_s7, 7 }
  0xbc   : > { %s441_s18 = scalar_lea.sflag [#allocation4], %s440_s9  ;;  %s1885_s15 = scalar_lea.hbm %s2496_s6, 128 }
  0xbd   : > { %p1886_p7 = scmp.ne.s32.totalorder %s2496_s6, %s1885_s15  ;;  %p1887_p5 = pneg %p2502_p8 }
  0xbe   : > { %s1890_s14 = scalar_lea.hbm %s2773_s0, 1024  ;;  %p1891_p2 = scmp.lt.u32.totalorder %s2496_s6, %s2773_s0 }
  0xbf   : > { %p1888_p9 = pnand %p1887_p5, %p1886_p7  ;;  %p1892_p11 = scmp.lt.u32.totalorder %s1890_s14, %s1885_s15 }
  0xc0   : > { %p1894_p3 = scmp.lt.u32.totalorder %s1885_s15, %s2496_s6 }
  0xc1   : > { %p1889_p12 = pneg %p1888_p9  ;;  %p1893_p1 = por %p1892_p11, %p1891_p2 }
  0xc3   : > { %p1895_p4 = por %p1894_p3, %p1893_p1 }
  0xc5   : > { %p1896_p6 = pnand %p1895_p4, %p1889_p12 }
  0xc7   : > { %1899 = shalt.err (!%p1896_p6)
}
  0xc8   : > { %s1900_s9 = scalar_lea.vmem %s2491_s10, 128  ;;  %s2115_s29 = smov [#allocation3]  }
  0xc9   : > { %p1901_p0 = scmp.ne.s32.totalorder %s2491_s10, %s1900_s9  ;;  %s1905_s5 = sshll.u32 %s2115_s29, 4  ;;  %s1906_s5 = int_to_ptr.vmem [resolvable:$false] %s1905_s5 }
  0xca   : > { %s1907_s7 = scalar_lea.vmem %s1906_s5, 256  ;;  %p1908_p9 = scmp.lt.s32.totalorder %s2491_s10, %s1906_s5 }
  0xcb   : > { %p1903_p13 = pnand %p1901_p0, %p1887_p5  ;;  %p1909_p2 = scmp.lt.s32.totalorder %s1907_s7, %s1900_s9 }
  0xcd   : > { %p1904_p7 = pneg %p1903_p13  ;;  %p1910_p11 = por %p1909_p2, %p1908_p9 }
  0xcf   : > { %p1911_p1 = pnand %p1910_p11, %p1904_p7 }
  0xd1   : > { %1914 = shalt.err (!%p1911_p1)
}
  0xd2   : > { %1585 = dma.hbm_to_vmem [thread:$0]  (!%p2502_p8), %s2496_s6, 128, %s2491_s10, %s441_s18  }
  0xd3   : > { %s2540_s1 = scalar_lea.hbm %s2775_s2, %s1442_s11  ;;  %s483_s14 = scalar_lea.vmem [#allocation8], %s2508_s22 }
  0xd4   : > { %s490_s12 = sshll.u32 %s483_s14, 4  ;;  %s1915_s24 = scalar_lea.hbm %s2540_s1, 2048  ;;  %s2543_s12 = int_to_ptr.vmem [resolvable:$true] %s490_s12 }
  0xd5   : > { %p1916_p5 = scmp.ne.s32.totalorder %s2540_s1, %s1915_s24  ;;  %p2878_p12 = scmp.ne.s32.totalorder %s2859_s26, 0 }
  0xd6   : > { %s1920_s11 = scalar_lea.hbm %s2775_s2, 8192  ;;  %p1921_p6 = scmp.lt.u32.totalorder %s2540_s1, %s2775_s2 }
  0xd7   : > { %p1917_p3 = pneg %p2878_p12  ;;  %p1922_p0 = scmp.lt.u32.totalorder %s1920_s11, %s1915_s24 }
  0xd8   : > { %p1924_p7 = scmp.lt.u32.totalorder %s1915_s24, %s2540_s1 }
  0xd9   : > { %p1918_p8 = pnand %p1917_p3, %p1916_p5  ;;  %p1923_p13 = por %p1922_p0, %p1921_p6 }
  0xdb   : > { %p1919_p4 = pneg %p1918_p8  ;;  %p1925_p9 = por %p1924_p7, %p1923_p13 }
  0xdd   : > { %p1926_p2 = pnand %p1925_p9, %p1919_p4 }
  0xdf   : > { %1929 = shalt.err (!%p1926_p2)
}
  0xe0   : > { %s1930_s22 = scalar_lea.vmem %s2543_s12, 2048  ;;  %s2116_s9 = smov [#allocation8]  }
  0xe1   : > { %p1931_p11 = scmp.ne.s32.totalorder %s2543_s12, %s1930_s22  ;;  %s1935_s29 = sshll.u32 %s2116_s9, 4  ;;  %s1936_s29 = int_to_ptr.vmem [resolvable:$false] %s1935_s29 }
  0xe2   : > { %s1937_s5 = scalar_lea.vmem %s1936_s29, 4096  ;;  %p1938_p8 = scmp.lt.s32.totalorder %s2543_s12, %s1936_s29 }
  0xe3   : > { %p1933_p1 = pnand %p1931_p11, %p1917_p3  ;;  %p1939_p6 = scmp.lt.s32.totalorder %s1937_s5, %s1930_s22 }
  0xe5   : > { %p1934_p5 = pneg %p1933_p1  ;;  %p1940_p0 = por %p1939_p6, %p1938_p8 }
  0xe7   : > { %p1941_p13 = pnand %p1940_p0, %p1934_p5 }
  0xe9   : > { %1944 = shalt.err (!%p1941_p13)
}
  0xea   : > { %1591 = dma.hbm_to_vmem [thread:$0]  (!%p2878_p12), %s2540_s1, 2048, %s2543_s12, %s2377_s28, %s2864_s25, %s2864_s25, %s2863_s8  }
  0xeb   : > { %p2879_p3 = scmp.ne.s32.totalorder %s2840_s23, 0 }
  0xec   : > { %s2880_s7 = sld [smem:[#allocation24_spill]] (!%p2879_p3) }
  0xed   : > { %502 = sbr.rel (%p2879_p3) target bundleno = 1651 (0x673), region = 72 }
  0xf2   : > { %s504_s4 = sand.u32 (!%p2879_p3), 1, %s2880_s7  }
  0xf3   : > { %s2577_s14 = sshll.u32 (!%p2879_p3), %s504_s4, 3  ;;  %s505_s24 = scalar_lea.sflag (!%p2879_p3), [#allocation4], %s504_s4 }
  0xf4   : > { %s508_s10 = scalar_lea.vmem [#allocation3], %s2577_s14 }
  0xf5   : > { %2030 = dma.done.wait (%p2468_p10), %s505_s24, 128  }
  0xf6   : > { %2032 = vsyncadd (%p2468_p10), %s505_s24, 4294967168  ;;  %s2882_s26 = sld [smem:[#allocation27_spill]]  ;;  %s2884_s11 = sld [smem:[#allocation28_spill]] }
  0xf7   : > { %s2883_s6 = sld [smem:[#allocation23_spill]] }
  0xfc   : > { %s513_s28 = sand.u32 1, %s2882_s26   ;;  %p2885_p12 = scmp.ne.s32.totalorder %s2884_s11, 0 }
  0xfd   : > { %s2586_s8 = sand.u32 1, %s2883_s6   ;;  %s514_s25 = scalar_lea.sflag [#allocation7], %s513_s28 }
  0xfe   : > { %s1379_s23 = sshll.u32 %s2586_s8, 2 }
  0xff   : > { %s2589_s1 = scalar_lea.vmem [#allocation6], %s1379_s23 }
 0x100   : > { %2034 = dma.done.wait (%p2885_p12), %s514_s25, 64  }
 0x101   : > { %2036 = vsyncadd (%p2885_p12), %s514_s25, 4294967232  ;;  %s2886_s12 = sld [smem:[#allocation21_spill]]  ;;  %s2887_s18 = sld [smem:[#allocation29_spill]] }
 0x107   : > { %s524_s13 = sand.u32 1, %s2886_s12   ;;  %p2888_p10 = scmp.ne.s32.totalorder %s2887_s18, 0 }
 0x108   : > { %s1380_s22 = sshll.u32 %s524_s13, 7 }
 0x109   : > { %s2596_s9 = scalar_lea.vmem [#allocation8], %s1380_s22 }
 0x10a   : > { %2038 = dma.done.wait (%p2888_p10), %s514_s25, 2048  }
 0x10b   : > { %2040 = vsyncadd (%p2888_p10), %s514_s25, 4294965248  ;;  %p2889_p4 = scmp.eq.s32.totalorder %s2882_s26, 0 }
 0x10d   : > { %2042 = dma.done.wait (%p2889_p4), [#allocation10], 2048   ;;  %p2890_p7 = pmov %p2889_p4 }
 0x10e   : > { %p2891_p9 = pmov %p2889_p4 }
 0x10f   : > { %2044 = vsyncadd (%p2890_p7), [#allocation10], 4294965248 }
 0x110   : > { %2046 = dma.done.wait (%p2891_p9), [#allocation13], 1024   ;;  %p2892_p2 = pmov %p2889_p4 }
 0x111   : > { %s1384_s29 = sshll.u32 %s2586_s8, 3  ;;  %s2893_s7 = sld [smem:[#allocation25_spill]] }
 0x112   : > { %2048 = vsyncadd (%p2892_p2), [#allocation13], 4294966272  ;;  %s2611_s5 = scalar_lea.vmem [#allocation14], %s1384_s29 }
 0x117   : > { %p1385_p11 = scmp.ne.s32.totalorder %s2893_s7, 0 }
 0x118   : > { %s2894_s24 = sld [smem:[#allocation37_spill]] (!%p1385_p11) }
 0x119   : > { %597 = sbr.rel (%p1385_p11) target bundleno = 288 (0x120), region = 100 }
 0x11e   : > { %v1386_v0 = vld [vmem:[%s2894_s24] ss:$0 sm:$0xff] (!%p1385_p11) }
 0x11f   : > { %605 = vst [vmem:[#allocation2] sm:$0xff] (!%p1385_p11), %v1386_v0 }
 0x120 PF: > { %v1723_v1 = vld [vmem:[%s2596_s9 + $0x40] sm:$0xff]   ;;  %v1725_v3 = vld [vmem:[%s2596_s9 + $0x48] sm:$0xff]   ;;  %v1727_v5 = vld [vmem:[%s2596_s9 + $0x50] sm:$0xff]   ;;  %s2895_s14 = sld [smem:[#allocation25_spill]] }
 0x121   : > { %v1724_v2 = vld [vmem:[%s2596_s9] sm:$0xff]   ;;  %1443 = vmatprep.subr.bf16.mxu0 %v1723_v1  ;;  %v1726_v4 = vld [vmem:[%s2596_s9 + $0x8] sm:$0xff]   ;;  %v1728_v6 = vld [vmem:[%s2596_s9 + $0x10] sm:$0xff]  }
 0x122   : > { %1444 = vmatpush3.bf16.msra.mxu0 %v1724_v2  ;;  %v1729_v7 = vld [vmem:[%s2596_s9 + $0x58] sm:$0xff]   ;;  %v1731_v9 = vld [vmem:[%s2596_s9 + $0x60] sm:$0xff]   ;;  %v1733_v11 = vld [vmem:[%s2596_s9 + $0x68] sm:$0xff]  }
 0x123   : > { %1445 = vmatprep.subr.bf16.mxu0 %v1725_v3  ;;  %v1730_v8 = vld [vmem:[%s2596_s9 + $0x18] sm:$0xff]   ;;  %v1732_v10 = vld [vmem:[%s2596_s9 + $0x20] sm:$0xff]   ;;  %v607_v12 = vld [vmem:[%s508_s10] sm:$0xff] }
 0x124   : > { %v1388_v13 = vcombine.high %v607_v12, %v607_v12  ;;  %v1734_v14 = vld [vmem:[%s2596_s9 + $0x28] sm:$0xff]   ;;  %v1735_v15 = vld [vmem:[%s2596_s9 + $0x70] sm:$0xff]   ;;  %v1737_v17 = vld [vmem:[%s2596_s9 + $0x78] sm:$0xff]   ;;  %v1387_v19 = vcombine.low %v607_v12, %v607_v12 }
 0x125   : > { %v1736_v16 = vld [vmem:[%s2596_s9 + $0x30] sm:$0xff]   ;;  %v1738_v18 = vld [vmem:[%s2596_s9 + $0x38] sm:$0xff]  }
 0x126   : > { %1446 = vmatpush3.bf16.msra.mxu0 %v1726_v4  ;;  %775 = vmatprep.mubr.bf16.mxu0 %v1388_v13  ;;  %v606_v21 = vld [vmem:[#allocation2] sm:$0xff]  ;;  %p1405_p1 = scmp.ne.s32.totalorder %s2895_s14, 3 }
 0x127   : > { %1447 = vmatprep.subr.bf16.mxu0 %v1727_v5  ;;  %v792_v27 = vlaneseq (!%p1405_p1)  ;;  %v2117_v28 = vmov (!%p1405_p1), 0.0   ;;  %v1741_v38 = vld [vmem:[#allocation11] sm:$0xff] (!%p1405_p1)   ;;  %v1743_v40 = vld [vmem:[#allocation11 + $0x8] sm:$0xff] (!%p1405_p1)   ;;  %v1745_v42 = vld [vmem:[#allocation11 + $0x10] sm:$0xff] (!%p1405_p1)   ;;  %vm2118_vm1 = vmmov (!%p1405_p1), 0   ;;  %s2896_s6 = sld [smem:[#allocation38_spill]] (!%p1405_p1) }
 0x128   : > { %1512 = vmatprep.subr.bf16.mxu1 (!%p1405_p1), %v2117_v28  ;;  %v1742_v39 = vld [vmem:[#allocation9] sm:$0xff] (!%p1405_p1)   ;;  %v1744_v41 = vld [vmem:[#allocation9 + $0x8] sm:$0xff] (!%p1405_p1)   ;;  %1528 = vmatprep.mubr.msk.bf16.mxu1 (!%p1405_p1), %vm2118_vm1, %v2117_v28  ;;  %v1746_v43 = vld [vmem:[#allocation9 + $0x10] sm:$0xff] (!%p1405_p1)   ;;  %s2897_s23 = sld [smem:[#allocation39_spill]] (!%p1405_p1)  ;;  %s2898_s12 = sld [smem:[#allocation42_spill]] (!%p1405_p1) }
 0x129   : > { %v2638_v30 = vand.u32 (!%p1405_p1), 127, %v792_v27  ;;  %1513 = vmatpush3.bf16.msra.mxu1 (!%p1405_p1), %v1742_v39  ;;  %v1747_v44 = vld [vmem:[#allocation11 + $0x18] sm:$0xff] (!%p1405_p1)   ;;  %v1749_v46 = vld [vmem:[#allocation11 + $0x20] sm:$0xff] (!%p1405_p1)   ;;  %v1751_v48 = vld [vmem:[#allocation11 + $0x28] sm:$0xff] (!%p1405_p1)   ;;  %s2899_s22 = sld [smem:[#allocation43_spill]] (!%p1405_p1)  ;;  %s2900_s7 = sld [smem:[#allocation44_spill]] (!%p1405_p1) }
 0x12a   : > { %1448 = vmatpush3.bf16.msra.mxu0 %v1728_v6  ;;  %1514 = vmatprep.subr.bf16.mxu1 (!%p1405_p1), %v2117_v28  ;;  %v1748_v45 = vld [vmem:[#allocation9 + $0x18] sm:$0xff] (!%p1405_p1)   ;;  %v1750_v47 = vld [vmem:[#allocation9 + $0x20] sm:$0xff] (!%p1405_p1)   ;;  %v1752_v49 = vld [vmem:[#allocation9 + $0x28] sm:$0xff] (!%p1405_p1)   ;;  %s2901_s24 = sld [smem:[#allocation46_spill]] (!%p1405_p1) }
 0x12b   : > { %1449 = vmatprep.subr.bf16.mxu0 %v1729_v7  ;;  %vm794_vm0 = vcmp.lt.s32.totalorder (!%p1405_p1), %v2638_v30, 50  ;;  %v1753_v50 = vld [vmem:[#allocation11 + $0x30] sm:$0xff] (!%p1405_p1)   ;;  %v1755_v52 = vld [vmem:[#allocation11 + $0x38] sm:$0xff] (!%p1405_p1)   ;;  %vm1046_vm2 = vcmp.lt.s32.totalorder (!%p1405_p1), %v2638_v30, 64 }
 0x12c   : > { %v1406_v31 = vsel (!%p1405_p1), %vm794_vm0, 1.0, %v2117_v28  ;;  %v1754_v51 = vld [vmem:[#allocation9 + $0x30] sm:$0xff] (!%p1405_p1)   ;;  %v1756_v53 = vld [vmem:[#allocation9 + $0x38] sm:$0xff] (!%p1405_p1)  }
 0x12d   : > { %1515 = vmatpush3.bf16.msra.mxu1 (!%p1405_p1), %v1744_v41  ;;  %v843_v54 = vld [vmem:[%s2589_s1] sm:$0xf] (!%p1405_p1)  ;;  %v1407_v59 = vld [vmem:[%s2896_s6] ss:$0 sm:$0xff] (!%p1405_p1) }
 0x12e   : > { %1450 = vmatpush3.bf16.msra.mxu0 %v1730_v8  ;;  %1516 = vmatprep.subr.bf16.mxu1 (!%p1405_p1), %v2117_v28  ;;  %v1408_v61 = vld [vmem:[%s2897_s23] ss:$0 sm:$0xff] (!%p1405_p1)  ;;  %v1764_v27 = vld [vmem:[#allocation12 + $0x38] sm:$0xff] (!%p1405_p1)  }
 0x12f   : > { %1451 = vmatprep.subr.bf16.mxu0 %v1731_v9  ;;  %v1425_v7 = vld [vmem:[%s2898_s12] ss:$0 sm:$0xff] (!%p1405_p1) }
 0x130   : > { %v1429_v39 = vld [vmem:[%s2901_s24] ss:$0 sm:$0xff] (!%p1405_p1) }
 0x131   : > { %1517 = vmatpush3.bf16.msra.mxu1 (!%p1405_p1), %v1746_v43 }
 0x132   : > { %1452 = vmatpush3.bf16.msra.mxu0 %v1732_v10  ;;  %1518 = vmatprep.subr.bf16.mxu1 (!%p1405_p1), %v2117_v28 }
 0x133   : > { %1453 = vmatprep.subr.bf16.mxu0 %v1733_v11  ;;  %v1426_v11 = vsel (!%p1405_p1), %vm1046_vm2, 1.0, %v2117_v28 }
 0x135   : > { %1519 = vmatpush3.bf16.msra.mxu1 (!%p1405_p1), %v1748_v45 }
 0x136   : > { %1454 = vmatpush3.bf16.msra.mxu0 %v1734_v14  ;;  %1520 = vmatprep.subr.bf16.mxu1 (!%p1405_p1), %v2117_v28 }
 0x137   : > { %1455 = vmatprep.subr.bf16.mxu0 %v1735_v15  ;;  %v1757_v15 = vld [vmem:[#allocation12] sm:$0xff] (!%p1405_p1)  }
 0x139   : > { %1521 = vmatpush3.bf16.msra.mxu1 (!%p1405_p1), %v1750_v47 }
 0x13a   : > { %1456 = vmatpush3.bf16.msra.mxu0 %v1736_v16  ;;  %1522 = vmatprep.subr.bf16.mxu1 (!%p1405_p1), %v2117_v28  ;;  %v1758_v16 = vld [vmem:[#allocation12 + $0x8] sm:$0xff] (!%p1405_p1)  }
 0x13b   : > { %1457 = vmatprep.subr.bf16.mxu0 %v1737_v17 }
 0x13d   : > { %1523 = vmatpush3.bf16.msra.mxu1 (!%p1405_p1), %v1752_v49 }
 0x13e   : > { %1458 = vmatpush3.bf16.msra.mxu0 %v1738_v18  ;;  %1524 = vmatprep.subr.bf16.mxu1 (!%p1405_p1), %v2117_v28 }
 0x13f   : > { %1492 = vmatprep.subr.bf16.mxu0 (!%p1405_p1), %v2117_v28 }
 0x141   : > { %776 = vmatmul.mubr.bf16.vlgmr.msra.gmra.mrb[0].mxu0 %v1387_v19  ;;  %1525 = vmatpush3.bf16.msra.mxu1 (!%p1405_p1), %v1754_v51 }
 0x142   : > { %1493 = vmatpush3.bf16.msra.mxu0 (!%p1405_p1), %v1741_v38  ;;  %1508 = vmatprep.mubr.msk.bf16.mxu0 (!%p1405_p1), %vm2118_vm1, %v2117_v28 }
 0x143   : > { %1494 = vmatprep.subr.bf16.mxu0 (!%p1405_p1), %v2117_v28  ;;  %1526 = vmatprep.subr.bf16.mxu1 (!%p1405_p1), %v2117_v28 }
 0x145   : > { %1527 = vmatpush3.bf16.msra.mxu1 (!%p1405_p1), %v1756_v53 }
 0x146   : > { %1495 = vmatpush3.bf16.msra.mxu0 (!%p1405_p1), %v1743_v40 }
 0x147   : > { %1496 = vmatprep.subr.bf16.mxu0 (!%p1405_p1), %v2117_v28 }
 0x14a   : > { %1497 = vmatpush3.bf16.msra.mxu0 (!%p1405_p1), %v1745_v42 }
 0x14b   : > { %1498 = vmatprep.subr.bf16.mxu0 (!%p1405_p1), %v2117_v28 }
 0x14e   : > { %1499 = vmatpush3.bf16.msra.mxu0 (!%p1405_p1), %v1747_v44 }
 0x14f   : > { %1500 = vmatprep.subr.bf16.mxu0 (!%p1405_p1), %v2117_v28 }
 0x152   : > { %1501 = vmatpush3.bf16.msra.mxu0 (!%p1405_p1), %v1749_v46 }
 0x153   : > { %1502 = vmatprep.subr.bf16.mxu0 (!%p1405_p1), %v2117_v28 }
 0x156   : > { %1503 = vmatpush3.bf16.msra.mxu0 (!%p1405_p1), %v1751_v48 }
 0x157   : > { %1504 = vmatprep.subr.bf16.mxu0 (!%p1405_p1), %v2117_v28 }
 0x15a   : > { %1505 = vmatpush3.bf16.msra.mxu0 (!%p1405_p1), %v1753_v50 }
 0x15b   : > { %1506 = vmatprep.subr.bf16.mxu0 (!%p1405_p1), %v2117_v28 }
 0x15e   : > { %1507 = vmatpush3.bf16.msra.mxu0 (!%p1405_p1), %v1755_v52 }
 0x15f   : > { %1532 = vmatprep.subr.bf16.mxu0 (!%p1405_p1), %v2117_v28 }
 0x214   : > { %v1459_v20 = vpop.f32.mrb[0].mxu0  ;;  %788 = sbr.rel (%p1405_p1) target bundleno = 1624 (0x658), region = 104 }
 0x215   : > { %v1460_v22 = vpop.f32.mrb[1].mxu0 }
 0x216   : > { %v1461_v23 = vadd.f32 %v1460_v22, %v1459_v20  ;;  %v1462_v24 = vpop.f32.mrb[2].mxu0  ;;  %v1759_v22 = vld [vmem:[#allocation12 + $0x10] sm:$0xff] (!%p1405_p1)  }
 0x217   : > { %v1463_v25 = vpop.f32.mrb[3].mxu0  ;;  %1509 = vmatmul.mubr.bf16.vlgmr.msra.gmra.mrb[0].mxu0 (!%p1405_p1), %v843_v54  ;;  %v1761_v24 = vld [vmem:[#allocation12 + $0x20] sm:$0xff] (!%p1405_p1)  }
 0x218   : > { %v783_v26 = vadd.f32 %v1461_v23, %v606_v21  ;;  %1548 = vmatprep.mubr.msk.bf16.mxu0 (!%p1405_p1), %vm2118_vm1, %v2117_v28  ;;  %1533 = vmatpush3.bf16.msra.mxu0 (!%p1405_p1), %v1757_v15  ;;  %v1760_v23 = vld [vmem:[#allocation12 + $0x18] sm:$0xff] (!%p1405_p1)   ;;  %v1762_v25 = vld [vmem:[#allocation12 + $0x28] sm:$0xff] (!%p1405_p1)  }
 0x219   : > { %1534 = vmatprep.subr.bf16.mxu0 (!%p1405_p1), %v2117_v28 }
 0x21a   : > { %784 = vst [vmem:[#allocation2] sm:$0xff] %v783_v26  ;;  %v1763_v26 = vld [vmem:[#allocation12 + $0x30] sm:$0xff] (!%p1405_p1)  }
 0x21c   : > { %1535 = vmatpush3.bf16.msra.mxu0 %v1758_v16 }
 0x21d   : > { %1536 = vmatprep.subr.bf16.mxu0 %v2117_v28 }
 0x220   : > { %1537 = vmatpush3.bf16.msra.mxu0 %v1759_v22 }
 0x221   : > { %v789_v29 = vld [vmem:[#allocation2] sm:$0xff]  ;;  %1538 = vmatprep.subr.bf16.mxu0 %v2117_v28 }
 0x222   : > { %v797_v32 = vmul.f32 %v1406_v31, %v789_v29 }
 0x224   : > { %798 = vadd.xlane.f32.xlu0 %v797_v32  ;;  %1539 = vmatpush3.bf16.msra.mxu0 %v1760_v23 }
 0x225   : > { %1540 = vmatprep.subr.bf16.mxu0 %v2117_v28 }
 0x228   : > { %1541 = vmatpush3.bf16.msra.mxu0 %v1761_v24 }
 0x229   : > { %1542 = vmatprep.subr.bf16.mxu0 %v2117_v28 }
 0x22c   : > { %1543 = vmatpush3.bf16.msra.mxu0 %v1762_v25 }
 0x22d   : > { %1544 = vmatprep.subr.bf16.mxu0 %v2117_v28 }
 0x230   : > { %1545 = vmatpush3.bf16.msra.mxu0 %v1763_v26 }
 0x231   : > { %1546 = vmatprep.subr.bf16.mxu0 %v2117_v28 }
 0x234   : > { %1547 = vmatpush3.bf16.msra.mxu0 %v1764_v27 }
 0x2b1   : > { %v799_v33 = vpop.xlane.xlu0 %798 }
 0x2b2   : > { %v801_v34 = vmul.f32 0.02, %v799_v33  ;;  %v1427_v33 = vld [vmem:[%s2899_s22] ss:$0 sm:$0xff] }
 0x2b4   : > { %v2642_v35 = vsub.f32 %v789_v29, %v801_v34 }
 0x2b6   : > { %v803_v36 = vmul.f32 %v1406_v31, %v2642_v35 }
 0x2b8   : > { %v804_v37 = vmul.f32 %v803_v36, %v803_v36 }
 0x2ba   : > { %805 = vadd.xlane.f32.xlu0 %v804_v37 }
 0x2ea   : > { %v942_v2 = vpop.f32.mrb[0].mxu0 }
 0x2eb   : > { %v1510_v3 = vpop.f32.mrb[1].mxu0 }
 0x2ec   : > { %v945_v4 = vpop.f32.mrb[2].mxu0 }
 0x2ed   : > { %v1511_v5 = vpop.f32.mrb[3].mxu0 }
 0x347   : > { %v806_v55 = vpop.xlane.xlu0 %805 }
 0x348   : > { %v807_v56 = vmul.f32 0.02, %v806_v55 }
 0x34a   : > { %v808_v57 = vadd.f32 1e-05, %v807_v56 }
 0x34c   : > { %1765 = vrsqrt.f32 %v808_v57 }
 0x356   : > { %v1766_v58 = vpop.eup %1765 }
 0x357   : > { %v810_v60 = vmul.f32 %v1766_v58, %v2642_v35  ;;  %v1428_v35 = vld [vmem:[%s2900_s7] ss:$0 sm:$0xff] }
 0x359   : > { %v817_v62 = vmul.f32 %v1407_v59, %v810_v60 }
 0x35b   : > { %v824_v63 = vadd.f32 %v1408_v61, %v817_v62 }
 0x35d   : > { %1767 = vtanh.f32 %v824_v63 }
 0x367   : > { %v1768_v0 = vpop.eup %1767 }
 0x368   : > { %v826_v1 = vpack.c.bf16 %v1768_v0, %v1768_v0 }
 0x36a   : > { %1529 = vmatmul.mubr.bf16.vlgmr.msra.gmra.mrb[0].mxu1 %v826_v1 }
 0x43d   : > { %v1030_v6 = vpop.f32.mrb[0].mxu1 }
 0x43e   : > { %v1031_v8 = vadd.f32 %v1030_v6, %v942_v2  ;;  %v1530_v9 = vpop.f32.mrb[1].mxu1 }
 0x43f   : > { %v1033_v10 = vpop.f32.mrb[2].mxu1 }
 0x440   : > { %v1531_v12 = vpop.f32.mrb[3].mxu1  ;;  %v1043_v13 = vadd.f32 %v1425_v7, %v1031_v8 }
 0x442   : > { %v1049_v14 = vmul.f32 %v1426_v11, %v1043_v13 }
 0x444   : > { %1050 = vadd.xlane.f32.xlu1 %v1049_v14 }
 0x4d1   : > { %v1051_v17 = vpop.xlane.xlu1 %1050 }
 0x4d2   : > { %v1053_v18 = vmul.f32 0.015625, %v1051_v17 }
 0x4d4   : > { %v1054_v19 = vsub.f32 %v1043_v13, %v1053_v18 }
 0x4d6   : > { %v1055_v20 = vmul.f32 %v1426_v11, %v1054_v19 }
 0x4d8   : > { %v1056_v21 = vmul.f32 %v1055_v20, %v1055_v20 }
 0x4da   : > { %1057 = vadd.xlane.f32.xlu1 %v1056_v21 }
 0x567   : > { %v1058_v29 = vpop.xlane.xlu1 %1057 }
 0x568   : > { %v1059_v30 = vmul.f32 0.015625, %v1058_v29 }
 0x56a   : > { %v1060_v31 = vadd.f32 1e-05, %v1059_v30 }
 0x56c   : > { %1769 = vrsqrt.f32 %v1060_v31 }
 0x576   : > { %v1770_v32 = vpop.eup %1769 }
 0x577   : > { %v1062_v34 = vmul.f32 %v1770_v32, %v1054_v19 }
 0x579   : > { %v1069_v36 = vmul.f32 %v1427_v33, %v1062_v34 }
 0x57b   : > { %v1076_v37 = vadd.f32 %v1428_v35, %v1069_v36 }
 0x57d   : > { %v1077_v38 = vmax.f32 %v1076_v37, 0.0 }
 0x57f   : > { %v1078_v28 = vpack.c.bf16 %v1077_v38, %v1077_v38 }
 0x581   : > { %1549 = vmatmul.mubr.bf16.vlgmr.msra.gmra.mrb[4].mxu0 %v1078_v28 }
 0x654   : > { %v1184_v40 = vpop.f32.mrb[4].mxu0 }
 0x655   : > { %v1185_v41 = vadd.f32 %v1429_v39, %v1184_v40  ;;  %v1550_v42 = vpop.f32.mrb[5].mxu0 }
 0x656   : > { %v1187_v43 = vpop.f32.mrb[6].mxu0 }
 0x657   : > { %1190 = vst [vmem:[%s2611_s5] sm:$0xff] %v1185_v41  ;;  %v1551_v44 = vpop.f32.mrb[7].mxu0 }
 0x658 PF: > { %s2902_s14 = sld [smem:[#allocation26_spill]]  ;;  %s2903_s10 = sld [smem:[#allocation30_spill]] }
 0x659   : > { %s2904_s28 = sld [smem:[#allocation47_spill]]  ;;  %s1205_s1 = sshll.u32 %s2611_s5, 4  ;;  %s1206_s1 = int_to_ptr.vmem [resolvable:$true] %s1205_s1 }
 0x65a   : > { %s1192_s12 = scalar_lea.sflag [#allocation5], %s2586_s8  ;;  %s1945_s18 = scalar_lea.vmem %s1206_s1, 128 }
 0x65b   : > { %p1946_p5 = scmp.ne.s32.totalorder %s1206_s1, %s1945_s18  ;;  %s2119_s13 = smov [#allocation14]  }
 0x65c   : > { %s1949_s22 = sshll.u32 %s2119_s13, 4  ;;  %s1950_s22 = int_to_ptr.vmem [resolvable:$false] %s1949_s22 }
 0x65d   : > { %s1951_s9 = scalar_lea.vmem %s1950_s22, 256  ;;  %p1952_p13 = scmp.lt.s32.totalorder %s1206_s1, %s1950_s22 }
 0x65e   : > { %s1439_s26 = sshll.u32 %s2902_s14, 7  ;;  %p2906_p8 = scmp.ne.s32.totalorder %s2903_s10, 0 }
 0x65f   : > { %s2905_s23 = smov %s2904_s28  ;;  %s2700_s25 = scalar_lea.hbm %s2904_s28, %s1439_s26 }
 0x660   : > { %p1947_p6 = pnand %p1946_p5, %p2906_p8  ;;  %p1953_p3 = scmp.lt.s32.totalorder %s1951_s9, %s1945_s18 }
 0x662   : > { %p1948_p0 = pneg %p1947_p6  ;;  %p1954_p12 = por %p1953_p3, %p1952_p13 }
 0x664   : > { %p1955_p10 = pnand %p1954_p12, %p1948_p0 }
 0x666   : > { %1958 = shalt.err (!%p1955_p10)
}
 0x667   : > { %s1959_s8 = scalar_lea.hbm %s2700_s25, 128  ;;  %s1963_s7 = scalar_lea.hbm %s2905_s23, 256 }
 0x668   : > { %p1960_p4 = scmp.ne.s32.totalorder %s2700_s25, %s1959_s8  ;;  %p1964_p2 = scmp.lt.u32.totalorder %s2700_s25, %s2905_s23 }
 0x669   : > { %p1965_p11 = scmp.lt.u32.totalorder %s1963_s7, %s1959_s8  ;;  %p1967_p5 = scmp.lt.u32.totalorder %s1959_s8, %s2700_s25 }
 0x66a   : > { %p1961_p7 = pnand %p1960_p4, %p2906_p8 }
 0x66b   : > { %p1966_p1 = por %p1965_p11, %p1964_p2 }
 0x66c   : > { %p1962_p9 = pneg %p1961_p7 }
 0x66d   : > { %p1968_p6 = por %p1967_p5, %p1966_p1 }
 0x66f   : > { %p1969_p0 = pnand %p1968_p6, %p1962_p9 }
 0x671   : > { %1972 = shalt.err (!%p1969_p0)
}
 0x672   : > { %1570 = dma.vmem_to_hbm [thread:$0]  (%p2906_p8), %s1206_s1, 128, %s2700_s25, %s1192_s12  }
 0x673 PF: > { %s2907_s24 = sld [smem:[#allocation22_spill]]  ;;  %s2908_s14 = sld [smem:[#allocation31_spill]] }
 0x674   : > { %p1603_p13 = scmp.ge.s32.totalorder %s2107_s21, 2 }
 0x679   : > { %s1217_s26 = sand.u32 1, %s2907_s24   ;;  %p2909_p3 = scmp.ne.s32.totalorder %s2908_s14, 0 }
 0x67a   : > { %s1218_s6 = scalar_lea.sflag [#allocation5], %s1217_s26 }
 0x67b   : > { %p1593_p12 = pnand %p1603_p13, %p2909_p3 }
 0x67d   : > { %2050 = dma.done.wait (!%p1593_p12), %s1218_s6, 128  }
 0x67e   : > { %2052 = vsyncadd (!%p1593_p12), %s1218_s6, 4294967168  ;;  %s34_s21 = sadd.s32 1, %s2107_s21   ;;  %s2911_s25 = sld [smem:[#allocation21_spill]] }
 0x67f   : > { %p2726_p10 = scmp.ge.s32.totalorder %s34_s21, 10   ;;  %s2912_s10 = sld [smem:[#allocation35_spill]] }
 0x680   : > { %s2913_s28 = sld [smem:[#allocation23_spill]]  ;;  %s2914_s14 = sld [smem:[#allocation24_spill]] }
 0x681   : > { %s2915_s1 = sld [smem:[#allocation32_spill]]  ;;  %s2916_s12 = sld [smem:[#allocation34_spill]] }
 0x682   : > { %s2917_s26 = smov %s2063_s27  ;;  %s2919_s29 = smov %s2075_s30 }
 0x683   : > { %s2920_s30 = smov %s2484_s3  ;;  %s2921_s15 = smov %s2087_s16 }
 0x684   : > { %s2922_s16 = smov %s2487_s17  ;;  %s2923_s17 = smov %s2099_s19 }
 0x685   : > { %s2918_s27 = smov %s2912_s10  ;;  %s2924_s18 = smov %s2103_s20 }
 0x686   :  { %33 = sbr.rel (!%p2726_p10) target bundleno = 27 (0x1b), region = 161 }
 0x687   : > { %s2925_s19 = smov %s2915_s1  ;;  %s2926_s20 = smov %s2916_s12 }
 0x68d   :  { %1223 = vsyncpa [#allocation4], 1 }
 0x68e   :  { %1225 = vsyncpa [#allocation4 + $0x1], 1 }
 0x68f   :  { %1226 = vsyncpa [#allocation7], 1 }
 0x690   :  { %1228 = vsyncpa [#allocation7 + $0x1], 1 }
 0x691   :  { %1229 = vsyncpa [#allocation10], 1 }
 0x692   :  { %1230 = vsyncpa [#allocation13], 1 }
 0x693   :  { %1231 = vsyncpa [#allocation5], 1 }
 0x694   :  { %1233 = vsyncpa [#allocation5 + $0x1], 1 }

</bundles_post_ra>
